<compile_context>
chip_gen: v5e
topology: v5e:2x2
jax: 0.10.0
libtpu: 0.0.40
codegen_flags: <defaults>
</compile_context>

<pallas_src>
import random

import jax
import jax.numpy as jnp
from jax.experimental import pallas as pl
from jax.experimental.pallas import tpu as pltpu


def _pos_emb_kernel(start_ref, emb_hbm_ref, out_ref, dma_sem):
    # start_ref:   SMEM scalar-prefetch (int32,) -- first position index.
    # emb_hbm_ref: (seq_len, model_dim) embedding table, left in HBM (pl.ANY).
    # out_ref:     (sl, model_dim) output, also left in HBM (pl.ANY).
    # dma_sem:     DMA completion semaphore.
    sl = out_ref.shape[0]
    seq_len = emb_hbm_ref.shape[0]
    # Clamp so start + sl <= seq_len: Pallas performs no runtime bounds check on DMAs.
    # (wrapper guarantees sl <= seq_len, so seq_len - sl >= 0 here.)
    s = jnp.clip(start_ref[0], 0, seq_len - sl)
    # Single direct HBM->HBM copy of the row slab -- one DMA pass, zero VMEM.
    cp = pltpu.make_async_copy(emb_hbm_ref.at[pl.ds(s, sl), :], out_ref, dma_sem)
    cp.start()
    cp.wait()


def position_embeddings_pallas(emb_table, sl, start):
    """Returns emb_table[start : start + sl, :] via a single HBM->HBM slice-DMA kernel.

    `start` may be a Python int or a traced/device int32 scalar.
    """
    seq_len, model_dim = emb_table.shape
    if sl > seq_len:
        raise ValueError(f"sl ({sl}) must be <= seq_len ({seq_len})")
    start_arr = jnp.atleast_1d(jnp.asarray(start, dtype=jnp.int32))
    # NOTE: `sl` is baked into out_shape, so each distinct sequence length compiles
    # once (inherent to static shapes in JAX).  Pad/bucket sl upstream if needed.
    return pl.pallas_call(
        _pos_emb_kernel,
        out_shape=jax.ShapeDtypeStruct((sl, model_dim), emb_table.dtype),
        grid_spec=pltpu.PrefetchScalarGridSpec(
            num_scalar_prefetch=1,
            grid=(1,),
            in_specs=[
                # Table stays in HBM; the kernel DMAs only the rows it needs.
                pl.BlockSpec(memory_space=pl.ANY),
            ],
            # Output stays in HBM too -> direct HBM->HBM DMA, no VMEM staging.
            out_specs=pl.BlockSpec(memory_space=pl.ANY),
            scratch_shapes=[pltpu.SemaphoreType.DMA(())],
        ),
        compiler_params=pltpu.CompilerParams(
            dimension_semantics=("arbitrary",),
        ),
    )(start_arr, emb_table)


class LearnedPositionEmbeddings:
    """JAX/Pallas port of the PyTorch LearnedPositionEmbeddings module."""

    def __init__(self, seq_len, model_dim, init=0.02, relative=False, key=None,
                 dtype=jnp.float32):
        if key is None:
            key = jax.random.PRNGKey(0)
        # torch.nn.Embedding(seq_len, model_dim).weight.data.normal_(0.0, init)
        # Pass dtype=jnp.bfloat16 in a bf16 model: this op is pure HBM bandwidth,
        # so narrowing the table at construction time halves its wall time.
        self.weight = (init * jax.random.normal(
            key, (seq_len, model_dim), dtype=jnp.float32)).astype(dtype)
        self.relative = relative
        self.seq_len = seq_len

    def __call__(self, x):
        # Only x.shape[1] is used, never its values (matches the PyTorch module).
        sl = x.shape[1]
        if sl > self.seq_len:
            raise ValueError(f"sl ({sl}) must be <= seq_len ({self.seq_len})")
        if self.relative:
            # Python random, inclusive upper bound -- same as the PyTorch module.
            start = random.randint(sl, self.seq_len) - sl
            # Dynamic start -> slice-DMA Pallas kernel (would be a traced scalar in
            # a jitted model; the kernel accepts either).
            # TODO(synk): in a full model, fuse this slice into the token-embedding-add
            # kernel (extra scalar-prefetch in_spec) instead of a standalone pallas_call.
            return position_embeddings_pallas(self.weight, sl, start)
        # Host-known start=0: a plain static slice is cheaper than any kernel dispatch
        # and XLA fuses it into the consumer.
        return self.weight[:sl, :]

    def get_fixed_embedding(self, ind):
        # emb(tensor([ind])).unsqueeze(0) -> shape (1, 1, model_dim).
        # ~512 B gather: never worth a custom-call; plain (dynamic) slice.
        if isinstance(ind, int):
            return self.weight[ind][None, None, :]
        return jax.lax.dynamic_slice_in_dim(self.weight, ind, 1, axis=0)[None, :, :]


if __name__ == "__main__":
    SEQ_LEN = 32      # max positions in the learned table
    MODEL_DIM = 128   # feature dim (lane-aligned)
    BATCH = 2
    SL = 8            # sequence length of the input x

    key = jax.random.PRNGKey(0)
    k_emb, k_x = jax.random.split(key)

    mod = LearnedPositionEmbeddings(SEQ_LEN, MODEL_DIM, init=0.02, relative=False, key=k_emb)

    # x only contributes its shape[1]; use integer token ids like the torch module would see.
    x = jax.random.randint(k_x, (BATCH, SL), 0, SEQ_LEN, dtype=jnp.int32)

    # Non-relative forward (static-start fast path).
    out = jax.block_until_ready(mod(x))
    assert out.shape == (SL, MODEL_DIM)
    assert jnp.allclose(out, mod.weight[0:SL, :], atol=0, rtol=0)

    # Directly exercise the Pallas kernel with an unaligned dynamic start (f32).
    start_dyn = jnp.int32(3)
    out_k = jax.block_until_ready(position_embeddings_pallas(mod.weight, SL, start_dyn))
    assert jnp.allclose(out_k, mod.weight[3:3 + SL, :], atol=0, rtol=0)

    # Relative forward (start drawn in Python; slab DMA'd HBM->HBM in the kernel).
    mod_rel = LearnedPositionEmbeddings(SEQ_LEN, MODEL_DIM, init=0.02, relative=True, key=k_emb)
    random.seed(0)
    expected_start = random.randint(SL, SEQ_LEN) - SL
    random.seed(0)
    out_rel = jax.block_until_ready(mod_rel(x))
    assert jnp.allclose(out_rel, mod_rel.weight[expected_start:expected_start + SL, :],
                        atol=0, rtol=0)

    # bf16 table through the kernel (exact: the kernel is a pure copy).
    mod_bf16 = LearnedPositionEmbeddings(SEQ_LEN, MODEL_DIM, init=0.02, relative=False,
                                         key=k_emb, dtype=jnp.bfloat16)
    out_bf16 = jax.block_until_ready(
        position_embeddings_pallas(mod_bf16.weight, SL, jnp.int32(5)))
    assert out_bf16.dtype == jnp.bfloat16
    assert jnp.array_equal(out_bf16, mod_bf16.weight[5:5 + SL, :])

    # get_fixed_embedding path (plain-slice fast path).
    fixed = jax.block_until_ready(mod.get_fixed_embedding(5))
    assert fixed.shape == (1, 1, MODEL_DIM)
    assert jnp.allclose(fixed[0, 0], mod.weight[5], atol=0, rtol=0)

    print("KERNEL_OK")
</pallas_src>

<mosaic_0001>
module attributes {stable_mosaic.version = 11 : i64} {
  func.func @_pos_emb_kernel(%arg0: i32, %arg1: memref<1xi32, #tpu.memory_space<smem>>, %arg2: memref<32x128xf32, #tpu.memory_space<any>>, %arg3: memref<8x128xf32, #tpu.memory_space<any>>, %arg4: memref<!tpu.dma_semaphore, #tpu.memory_space<semaphore_mem>>) attributes {dimension_semantics = [#tpu.dimension_semantics<arbitrary>], iteration_bounds = array<i64: 1>, scalar_prefetch = 1 : i64, scratch_operands = 1 : i64, tpu.core_type = #tpu.core_type<tc>, window_params = [{}, {}]} {
    %c0 = arith.constant 0 : index
    %0 = memref.load %arg1[%c0] : memref<1xi32, #tpu.memory_space<smem>>
    %c0_i32 = arith.constant 0 : i32
    %c24_i32 = arith.constant 24 : i32
    %1 = arith.maxsi %c0_i32, %0 : i32
    %2 = arith.minsi %c24_i32, %1 : i32
    %c0_i32_0 = arith.constant 0 : i32
    %3 = tpu.memref_slice %arg2[%2, %c0_i32_0] : memref<32x128xf32, #tpu.memory_space<any>> -> memref<8x128xf32, #tpu.memory_space<any>>
    tpu.enqueue_dma source(%3 : memref<8x128xf32, #tpu.memory_space<any>>) target(%arg3 : memref<8x128xf32, #tpu.memory_space<any>>) target_semaphore(%arg4 : memref<!tpu.dma_semaphore, #tpu.memory_space<semaphore_mem>>)
    %c0_i32_1 = arith.constant 0 : i32
    %4 = tpu.memref_slice %arg2[%2, %c0_i32_1] : memref<32x128xf32, #tpu.memory_space<any>> -> memref<8x128xf32, #tpu.memory_space<any>>
    tpu.wait_dma2 semaphore(%arg4 : memref<!tpu.dma_semaphore, #tpu.memory_space<semaphore_mem>>) src(%4 : memref<8x128xf32, #tpu.memory_space<any>>) dst(%arg3 : memref<8x128xf32, #tpu.memory_space<any>>)
    return
  }
}

</mosaic_0001>

<bundles_post_ra>
// kernel: tpu_custom_call.1
= control target key start
LH: loop header
LB: loop body
LE: loop exit
PB: predicated region body
PF: predicated region fallthrough
CT: control target
= control target key end

     0   :  { %s48_s22 = smov [#allocation2]   ;;  %s49_s23 = smov [#allocation5]   ;;  %s81_s0 = inlined_call_operand.<no memory space> [shape: s32[1], index: 0, kind: input, shape index: {}]   ;;  %s82_s2 = inlined_call_operand.hbm [shape: f32[8,128], index: 2, kind: output, shape index: {}]   ;;  %s83_s1 = inlined_call_operand.hbm [shape: f32[32,128], index: 1, kind: input, shape index: {}]  }
   0x1   :  { %p9_p0 = scmp.gt.s32.totalorder %s81_s0, 0  ;;  %p35_p1 = scmp.lt.s32.totalorder %s81_s0, 24 }
   0x2   :  { %s20_s17 = sshll.u32 %s82_s2, 4  ;;  %s50_s24 = smov 0   ;;  %s21_s17 = int_to_ptr.hbm [resolvable:$true] %s20_s17 }
   0x3   :  { %s85_s0 = smov (!%p9_p0, %s81_s0), 0 }
   0x4   :  { %s87_s0 = smov (!%p35_p1, %s85_s0), 24 }
   0x5   :  { %s13_s20 = scalar_lea.hbm %s83_s1, %s87_s0 }
   0x6   :  { %s18_s21 = sshll.u32 %s13_s20, 4  ;;  %s19_s21 = int_to_ptr.hbm [resolvable:$true] %s18_s21 }
   0x7   :  { %24 = dma.general %s19_s21, 128, %s21_s17, %s48_s22, %s49_s23, [#allocation6], %s50_s24, 0  }
   0x8   :  { %46 = dma.done.wait [#allocation2], 128 }
   0x9   :  { %47 = vsyncadd [#allocation2], 4294967168 }
   0xa   :  { %28 = vsyncmov [#allocation2] }
   0xd   :  { %s29_s25 = vpop.sfrf %28 }
   0xe   :  { %p40_p2 = scmp.ne.s32.totalorder %s29_s25, 0 }
  0x10   :  { %33 = shalt.err (%p40_p2)  }

</bundles_post_ra>
